<compile_context>
chip_gen: v7x
topology: tpu7x:2x2x1
jax: 0.10.0
libtpu: 0.0.40
codegen_flags: <defaults>
</compile_context>

<pallas_src>
import functools

import jax
import jax.numpy as jnp
from jax.experimental import pallas as pl
from jax.experimental.pallas import tpu as pltpu

PAD = 128            # padded hidden width (sublane axis of activations)
LANES = 128          # lane width; batch tile must be a multiple of this
DEFAULT_TILE_B = 1024


def _round_up(n, m):
    return (n + m - 1) // m * m


def mlp_kernel(x_ref, wstack_ref, small_ref, o_ref):
    x = x_ref[...]                      # (1, TB)   batch along lanes
    small = small_ref[...]              # (PAD, 8)  packed small vectors
    w1 = small[:, 0:1]                  # (PAD, 1)  layer-1 weight column (fan_in = 1)
    b1 = small[:, 1:2]
    b2 = small[:, 2:3]
    b3 = small[:, 3:4]
    w4 = small[:, 4:5]                  # (PAD, 1)  layer-4 weight column (fan_out = 1)
    b4 = small[0:1, 5:6]                # (1, 1)    layer-4 bias scalar

    # Layer 1: rank-1 outer product -> pure VPU broadcast multiply-add. (PAD, TB)
    h = jnp.maximum(w1 * x + b1, 0.0)
    # Layers 2-3: single-tile (128,128)@(128,TB) MXU matmuls + VPU bias/ReLU.
    h = jnp.maximum(
        jnp.dot(wstack_ref[0], h, preferred_element_type=jnp.float32) + b2, 0.0)
    h = jnp.maximum(
        jnp.dot(wstack_ref[1], h, preferred_element_type=jnp.float32) + b3, 0.0)
    # Layer 4: VPU multiply by the single W4 column + sublane (XLU) reduction.
    # Result is a lane-dense (1, TB) row -> no write amplification, no 3rd matmul.
    out = jnp.sum(h * w4, axis=0, keepdims=True) + b4
    o_ref[...] = out.astype(o_ref.dtype)


def nn_forward(x, packed, *, tile_b=DEFAULT_TILE_B):
    """x: (B, 1) f32.  packed = (wstack (2,PAD,PAD), small (PAD,8)).  Returns (B, 1)."""
    wstack, small = packed
    B = x.shape[0]
    tb = min(tile_b, _round_up(B, LANES))
    b_pad = _round_up(B, tb)
    n_tiles = b_pad // tb

    # Lane-dense (1, B_pad) view of the batch, zero-padded tail.
    x_row = jnp.zeros((1, b_pad), jnp.float32).at[0, :B].set(
        x[:, 0].astype(jnp.float32))

    # NOTE: for a repeated inference loop with fixed weights, the weight slabs
    # could additionally be kept resident across pallas_calls (cross-call
    # future pattern); within one call the constant index_maps already keep
    # them resident across all grid steps.
    out = pl.pallas_call(
        mlp_kernel,
        out_shape=jax.ShapeDtypeStruct((1, b_pad), jnp.float32),
        grid=(n_tiles,),
        in_specs=[
            pl.BlockSpec((1, tb), lambda i: (0, i)),           # x tile (pipelined)
            pl.BlockSpec((2, PAD, PAD), lambda i: (0, 0, 0)),  # weights: resident
            pl.BlockSpec((PAD, 8), lambda i: (0, 0)),          # small slab: resident
        ],
        out_specs=pl.BlockSpec((1, tb), lambda i: (0, i)),     # lane-dense output
        compiler_params=pltpu.CompilerParams(
            dimension_semantics=("parallel",),   # megacore sharding on v7x
            vmem_limit_bytes=32 * 1024 * 1024,
        ),
    )(x_row, wstack, small)
    return out[0, :B].reshape(B, 1)


def init_params(key):
    """PyTorch Linear default init: U(+/- 1/sqrt(fan_in)) for W and b.
    Weights stored as (in_features, out_features) so forward is x @ W + b."""
    dims = [(1, 100), (100, 50), (50, 20), (20, 1)]
    params = []
    for fan_in, fan_out in dims:
        key, kw, kb = jax.random.split(key, 3)
        bound = 1.0 / jnp.sqrt(jnp.float32(fan_in))
        w = jax.random.uniform(kw, (fan_in, fan_out), jnp.float32, -bound, bound)
        b = jax.random.uniform(kb, (1, fan_out), jnp.float32, -bound, bound)
        params.append((w, b))
    return params


def pack_params(params):
    """Zero-pad to 128 and pack: wstack holds W2^T, W3^T; `small` holds the
    layer-1 weight column, all four biases and the layer-4 weight column."""
    (w1, b1), (w2, b2), (w3, b3), (w4, b4) = params

    def pad_t(w):                       # (fan_in, fan_out) -> (PAD, PAD) holding W^T
        fi, fo = w.shape
        return jnp.zeros((PAD, PAD), jnp.float32).at[:fo, :fi].set(w.T)

    wstack = jnp.stack([pad_t(w2), pad_t(w3)], axis=0)          # (2, PAD, PAD)

    small = jnp.zeros((PAD, 8), jnp.float32)
    small = small.at[: w1.shape[1], 0].set(w1[0, :])            # W1 row   -> column 0
    small = small.at[: b1.shape[-1], 1].set(b1.reshape(-1))
    small = small.at[: b2.shape[-1], 2].set(b2.reshape(-1))
    small = small.at[: b3.shape[-1], 3].set(b3.reshape(-1))
    small = small.at[: w4.shape[0], 4].set(w4[:, 0])            # W4 column -> column 4
    small = small.at[0, 5].set(b4.reshape(-1)[0])               # b4 scalar
    return wstack, small


def reference_forward(x, params):
    h = x
    for i, (w, b) in enumerate(params):
        h = jnp.dot(h, w, precision=jax.lax.Precision.HIGHEST) + b
        if i < len(params) - 1:
            h = jnp.maximum(h, 0.0)
    return h


if __name__ == "__main__":
    key = jax.random.PRNGKey(0)
    kx1, kx2, kp = jax.random.split(key, 3)
    params = init_params(kp)
    packed = pack_params(params)

    fwd = jax.jit(functools.partial(nn_forward, tile_b=256))

    # Small batch: single (padded) tile, grid=(1,).
    x_small = jax.random.normal(kx1, (8, 1), jnp.float32)
    out_small = jax.block_until_ready(fwd(x_small, packed))
    ref_small = reference_forward(x_small, params)
    assert out_small.shape == (8, 1)
    assert jnp.allclose(out_small, ref_small, atol=1e-4, rtol=1e-4), "mismatch (B=8)"

    # Larger, non-multiple-of-tile batch: exercises the batch grid, resident
    # weight slabs across steps, and the zero-padded tail tile.
    x_big = jax.random.normal(kx2, (1000, 1), jnp.float32)
    out_big = jax.block_until_ready(fwd(x_big, packed))
    ref_big = reference_forward(x_big, params)
    assert out_big.shape == (1000, 1)
    assert jnp.allclose(out_big, ref_big, atol=1e-4, rtol=1e-4), "mismatch (B=1000)"

    print("KERNEL_OK")
</pallas_src>

<mosaic_0001>
module attributes {stable_mosaic.version = 11 : i64} {
  func.func @mlp_kernel(%arg0: i32, %arg1: memref<1x128xf32, #tpu.memory_space<vmem>>, %arg2: memref<2x128x128xf32, #tpu.memory_space<vmem>>, %arg3: memref<128x8xf32, #tpu.memory_space<vmem>>, %arg4: memref<1x128xf32, #tpu.memory_space<vmem>>) attributes {dimension_semantics = [#tpu.dimension_semantics<parallel>], iteration_bounds = array<i64: 1>, scalar_prefetch = 0 : i64, scratch_operands = 0 : i64, tpu.core_type = #tpu.core_type<tc>, window_params = [{transform_indices = @transform_0, window_bounds = array<i64: 1, 128>}, {pipeline_mode = #tpu.pipeline_mode<synchronous>, transform_indices = @transform_1, window_bounds = array<i64: 2, 128, 128>}, {pipeline_mode = #tpu.pipeline_mode<synchronous>, transform_indices = @transform_2, window_bounds = array<i64: 128, 8>}, {transform_indices = @transform_3, window_bounds = array<i64: 1, 128>}]} {
    %c0 = arith.constant 0 : index
    %c0_0 = arith.constant 0 : index
    %0 = vector.load %arg1[%c0, %c0_0] : memref<1x128xf32, #tpu.memory_space<vmem>>, vector<1x128xf32>
    %c0_1 = arith.constant 0 : index
    %c0_2 = arith.constant 0 : index
    %1 = vector.load %arg3[%c0_1, %c0_2] : memref<128x8xf32, #tpu.memory_space<vmem>>, vector<128x8xf32>
    %2 = vector.extract_strided_slice %1 {offsets = [0, 0], sizes = [128, 1], strides = [1, 1]} : vector<128x8xf32> to vector<128x1xf32>
    %3 = vector.extract_strided_slice %1 {offsets = [0, 1], sizes = [128, 1], strides = [1, 1]} : vector<128x8xf32> to vector<128x1xf32>
    %4 = vector.extract_strided_slice %1 {offsets = [0, 2], sizes = [128, 1], strides = [1, 1]} : vector<128x8xf32> to vector<128x1xf32>
    %5 = vector.extract_strided_slice %1 {offsets = [0, 3], sizes = [128, 1], strides = [1, 1]} : vector<128x8xf32> to vector<128x1xf32>
    %6 = vector.extract_strided_slice %1 {offsets = [0, 4], sizes = [128, 1], strides = [1, 1]} : vector<128x8xf32> to vector<128x1xf32>
    %7 = vector.extract_strided_slice %1 {offsets = [0, 5], sizes = [1, 1], strides = [1, 1]} : vector<128x8xf32> to vector<1x1xf32>
    %8 = vector.broadcast %2 : vector<128x1xf32> to vector<128x128xf32>
    %9 = vector.broadcast %0 : vector<1x128xf32> to vector<128x128xf32>
    %10 = arith.mulf %8, %9 : vector<128x128xf32>
    %11 = vector.broadcast %3 : vector<128x1xf32> to vector<128x128xf32>
    %12 = arith.addf %10, %11 : vector<128x128xf32>
    %cst = arith.constant 0.000000e+00 : f32
    %13 = vector.broadcast %cst : f32 to vector<128x128xf32>
    %14 = arith.maximumf %12, %13 : vector<128x128xf32>
    %c0_3 = arith.constant 0 : index
    %c0_4 = arith.constant 0 : index
    %c0_5 = arith.constant 0 : index
    %15 = vector.load %arg2[%c0_3, %c0_4, %c0_5] : memref<2x128x128xf32, #tpu.memory_space<vmem>>, vector<1x128x128xf32>
    %16 = vector.shape_cast %15 : vector<1x128x128xf32> to vector<128x128xf32>
    %cst_6 = arith.constant dense<0.000000e+00> : vector<128x128xf32>
    %17 = tpu.matmul %16, %14, %cst_6 {dimension_numbers = #tpu.dot_dimension_numbers<[1], [0], [0], [1], [0, 0, 1, 1], [], []>} : vector<128x128xf32>, vector<128x128xf32>, vector<128x128xf32> -> vector<128x128xf32>
    %18 = vector.broadcast %4 : vector<128x1xf32> to vector<128x128xf32>
    %19 = arith.addf %17, %18 : vector<128x128xf32>
    %cst_7 = arith.constant 0.000000e+00 : f32
    %20 = vector.broadcast %cst_7 : f32 to vector<128x128xf32>
    %21 = arith.maximumf %19, %20 : vector<128x128xf32>
    %c1 = arith.constant 1 : index
    %c0_8 = arith.constant 0 : index
    %c0_9 = arith.constant 0 : index
    %22 = vector.load %arg2[%c1, %c0_8, %c0_9] : memref<2x128x128xf32, #tpu.memory_space<vmem>>, vector<1x128x128xf32>
    %23 = vector.shape_cast %22 : vector<1x128x128xf32> to vector<128x128xf32>
    %cst_10 = arith.constant dense<0.000000e+00> : vector<128x128xf32>
    %24 = tpu.matmul %23, %21, %cst_10 {dimension_numbers = #tpu.dot_dimension_numbers<[1], [0], [0], [1], [0, 0, 1, 1], [], []>} : vector<128x128xf32>, vector<128x128xf32>, vector<128x128xf32> -> vector<128x128xf32>
    %25 = vector.broadcast %5 : vector<128x1xf32> to vector<128x128xf32>
    %26 = arith.addf %24, %25 : vector<128x128xf32>
    %cst_11 = arith.constant 0.000000e+00 : f32
    %27 = vector.broadcast %cst_11 : f32 to vector<128x128xf32>
    %28 = arith.maximumf %26, %27 : vector<128x128xf32>
    %29 = vector.broadcast %6 : vector<128x1xf32> to vector<128x128xf32>
    %30 = arith.mulf %28, %29 : vector<128x128xf32>
    %cst_12 = arith.constant dense<0.000000e+00> : vector<128xf32>
    %31 = vector.multi_reduction <add>, %30, %cst_12 [0] : vector<128x128xf32> to vector<128xf32>
    %32 = vector.shape_cast %31 : vector<128xf32> to vector<1x128xf32>
    %33 = vector.broadcast %7 : vector<1x1xf32> to vector<1x128xf32>
    %34 = arith.addf %32, %33 : vector<1x128xf32>
    %c0_13 = arith.constant 0 : index
    %c0_14 = arith.constant 0 : index
    %35 = vector.load %arg4[%c0_13, %c0_14] : memref<1x128xf32, #tpu.memory_space<vmem>>, vector<1x128xf32>
    tpu.vector_store %arg4[%c0_13, %c0_14], %34 {strides = array<i32>} : memref<1x128xf32, #tpu.memory_space<vmem>>, vector<1x128xf32>,
    return
  }
  func.func @transform_0(%arg0: i32) -> (i32, i32) {
    %c0_i32 = arith.constant 0 : i32
    %c0_i32_0 = arith.constant 0 : i32
    return %c0_i32, %arg0 : i32, i32
  }
  func.func @transform_1(%arg0: i32) -> (i32, i32, i32) {
    %c0_i32 = arith.constant 0 : i32
    %c0_i32_0 = arith.constant 0 : i32
    %c0_i32_1 = arith.constant 0 : i32
    %c0_i32_2 = arith.constant 0 : i32
    return %c0_i32, %c0_i32_0, %c0_i32_1 : i32, i32, i32
  }
  func.func @transform_2(%arg0: i32) -> (i32, i32) {
    %c0_i32 = arith.constant 0 : i32
    %c0_i32_0 = arith.constant 0 : i32
    %c0_i32_1 = arith.constant 0 : i32
    return %c0_i32, %c0_i32_0 : i32, i32
  }
  func.func @transform_3(%arg0: i32) -> (i32, i32) {
    %c0_i32 = arith.constant 0 : i32
    %c0_i32_0 = arith.constant 0 : i32
    return %c0_i32, %arg0 : i32, i32
  }
}

</mosaic_0001>

<bundles_post_ra>
// kernel: nn_forward.1
= control target key start
LH: loop header
LB: loop body
LE: loop exit
PB: predicated region body
PF: predicated region fallthrough
CT: control target
= control target key end

     0   :  { %8 = vsyncpa [#allocation3], 0  ;;  %s1146_s12 = smov [#allocation2]   ;;  %s1390_s0 = inlined_call_operand.vmem [shape: f32[1,128], index: 0, kind: input, shape index: {}]   ;;  %s1391_s1 = inlined_call_operand.hbm [shape: f32[2,128,128], index: 1, kind: input, shape index: {}]   ;;  %s1392_s2 = inlined_call_operand.vmem [shape: f32[128,8], index: 2, kind: input, shape index: {}]   ;;  %s1393_s3 = inlined_call_operand.vmem [shape: f32[1,128], index: 3, kind: output, shape index: {}]  }
   0x1   :  { %s16_s13 = sshll.u32 %s1146_s12, 4  ;;  %s1122_s16 = scalar_lea.hbm %s1391_s1, 4096  ;;  %s17_s13 = int_to_ptr.vmem [resolvable:$true] %s16_s13 }
   0x2   :  { %p1123_p0 = scmp.ne.s32.totalorder %s1391_s1, %s1122_s16  ;;  %p1126_p1 = scmp.lt.u32.totalorder %s1122_s16, %s1391_s1 }
   0x4   :  { %p1128_p2 = pnand %p1126_p1, %p1123_p0 }
   0x6   :  { %1131 = shalt.err (!%p1128_p2)
}
   0x7   :  { %s1132_s21 = scalar_lea.vmem %s17_s13, 4096  ;;  %p1137_p4 = scmp.lt.s32.totalorder %s17_s13, %s17_s13 }
   0x8   :  { %p1133_p3 = scmp.ne.s32.totalorder %s17_s13, %s1132_s21  ;;  %p1138_p5 = scmp.lt.s32.totalorder %s1132_s21, %s1132_s21 }
   0xa   :  { %p1139_p6 = por %p1138_p5, %p1137_p4 }
   0xc   :  { %p1140_p7 = pnand %p1139_p6, %p1133_p3 }
   0xe   :  { %1143 = shalt.err (!%p1140_p7)
}
   0xf   :  { %s1147_s22 = smov 128   ;;  %s1148_s23 = smov 8  }
  0x10   :  { %22 = dma.hbm_to_vmem [thread:$0]  %s1391_s1, 4096, %s17_s13, [#allocation3], %s1147_s22, %s1147_s22, %s1148_s23  }
  0x11   :  { %1144 = dma.done.wait [#allocation3], 4096  }
  0x12   :  { %1145 = vsyncadd [#allocation3], 4294963200  ;;  %v1149_v0 = vmov 1   ;;  %v1192_v1 = vld [vmem:[%s1392_s2 + $0x10] sm:$0xff]  ;;  %v1197_v2 = vld [vmem:[%s1392_s2] sm:$0xff]  ;;  %v1150_v7 = vmov 0  }
  0x13   :  { %1090 = vset.pattern.permute.xlu0 %v1149_v0  ;;  %1088 = vset.pattern.permute.xlu1 %v1149_v0  ;;  %v1204_v3 = vld [vmem:[%s1392_s2 + $0x30] sm:$0xff]  ;;  %v1209_v4 = vld [vmem:[%s1392_s2 + $0x8] sm:$0xff]  ;;  %v1221_v6 = vld [vmem:[%s1392_s2 + $0x18] sm:$0xff]  ;;  %v1151_v19 = vmov 2  }
  0x14   :  { %156 = vperm.xlu0 %1090, %v1192_v1   ;;  %148 = vperm.xlu1 %1088, %v1197_v2   ;;  %v1216_v5 = vld [vmem:[%s1392_s2 + $0x50] sm:$0xff]  ;;  %v1231_v8 = vld [vmem:[%s1392_s2 + $0x20] sm:$0xff]  ;;  %v1239_v9 = vld [vmem:[%s1392_s2 + $0x28] sm:$0xff] }
  0x15   :  { %v1249_v10 = vld [vmem:[%s1392_s2 + $0x48] sm:$0xff]  ;;  %v1254_v11 = vld [vmem:[%s1392_s2 + $0x38] sm:$0xff]  ;;  %v1269_v13 = vld [vmem:[%s1392_s2 + $0x40] sm:$0xff] }
  0x16   :  { %v1264_v12 = vld [vmem:[%s1392_s2 + $0x68] sm:$0xff]  ;;  %v1275_v14 = vld [vmem:[%s1392_s2 + $0x70] sm:$0xff]  ;;  %v1287_v15 = vld [vmem:[%s1392_s2 + $0x58] sm:$0xff] }
  0x17   :  { %v1295_v16 = vld [vmem:[%s1392_s2 + $0x60] sm:$0xff]  ;;  %v1304_v17 = vld [vmem:[%s1392_s2 + $0x78] sm:$0xff] }
  0x18   :  { %172 = vperm.xlu0 %1090, %v1204_v3   ;;  %152 = vperm.xlu1 %1088, %v1209_v4   ;;  %v243_v18 = vld [vmem:[#allocation2] sm:$0xff] }
  0x19   :  { %935 = vmatprep.mubr.f32.mxu0 %v243_v18  ;;  %v1322_v26 = vld [vmem:[%s1390_s0] ss:$0 sm:$0xff] }
  0x1c   :  { %188 = vperm.xlu0 %1090, %v1216_v5   ;;  %1089 = vset.pattern.permute.xlu1 %v1150_v7 }
  0x1d   :  { %62 = vperm.xlu1 %1089, %v1221_v6  }
  0x20   :  { %1099 = vset.pattern.permute.xlu0 %v1150_v7 }
  0x21   :  { %47 = vperm.xlu0 %1099, %v1197_v2   ;;  %1091 = vset.pattern.permute.xlu1 %v1149_v0 }
  0x22   :  { %160 = vperm.xlu1 %1091, %v1221_v6  }
  0x25   :  { %52 = vperm.xlu0 %1099, %v1209_v4  }
  0x26   :  { %1092 = vset.pattern.permute.xlu1 %v1150_v7 }
  0x27   :  { %67 = vperm.xlu1 %1092, %v1231_v8  }
  0x29   :  { %57 = vperm.xlu0 %1099, %v1192_v1  }
  0x2b   :  { %1093 = vset.pattern.permute.xlu1 %v1149_v0 }
  0x2c   :  { %164 = vperm.xlu1 %1093, %v1231_v8  }
  0x2d   :  { %72 = vperm.xlu0 %1099, %v1239_v9  }
  0x30   :  { %168 = vperm.xlu1 %1093, %v1239_v9  }
  0x31   :  { %77 = vperm.xlu0 %1099, %v1204_v3  }
  0x34   :  { %1094 = vset.pattern.permute.xlu1 %v1150_v7 }
  0x35   :  { %92 = vperm.xlu0 %1099, %v1249_v10   ;;  %82 = vperm.xlu1 %1094, %v1254_v11  }
  0x39   :  { %97 = vperm.xlu0 %1099, %v1216_v5   ;;  %1095 = vset.pattern.permute.xlu1 %v1149_v0 }
  0x3a   :  { %176 = vperm.xlu1 %1095, %v1254_v11  }
  0x3d   :  { %112 = vperm.xlu0 %1099, %v1264_v12  }
  0x3e   :  { %1096 = vset.pattern.permute.xlu1 %v1150_v7 }
  0x3f   :  { %87 = vperm.xlu1 %1096, %v1269_v13  }
  0x41   :  { %117 = vperm.xlu0 %1099, %v1275_v14  }
  0x43   :  { %1097 = vset.pattern.permute.xlu1 %v1149_v0 }
  0x44   :  { %180 = vperm.xlu1 %1097, %v1269_v13  }
  0x45   :  { %1104 = vset.pattern.permute.xlu0 %v1149_v0 }
  0x46   :  { %204 = vperm.xlu0 %1104, %v1275_v14  }
  0x48   :  { %184 = vperm.xlu1 %1097, %v1249_v10  }
  0x4a   :  { %1107 = vset.pattern.permute.xlu0 %v1151_v19 }
  0x4b   :  { %264 = vperm.xlu0 %1107, %v1209_v4  }
  0x4c   :  { %1098 = vset.pattern.permute.xlu1 %v1150_v7 }
  0x4d   :  { %102 = vperm.xlu1 %1098, %v1287_v15  }
  0x4f   :  { %276 = vperm.xlu0 %1107, %v1231_v8  }
  0x51   :  { %1100 = vset.pattern.permute.xlu1 %v1149_v0 }
  0x52   :  { %192 = vperm.xlu1 %1100, %v1287_v15  }
  0x53   :  { %284 = vperm.xlu0 %1107, %v1204_v3  }
  0x56   :  { %1101 = vset.pattern.permute.xlu1 %v1150_v7 }
  0x57   :  { %107 = vperm.xlu1 %1101, %v1295_v16   ;;  %292 = vperm.xlu0 %1107, %v1269_v13  }
  0x5b   :  { %1102 = vset.pattern.permute.xlu1 %v1149_v0  ;;  %300 = vperm.xlu0 %1107, %v1216_v5  }
  0x5c   :  { %196 = vperm.xlu1 %1102, %v1295_v16  }
  0x5f   :  { %308 = vperm.xlu0 %1107, %v1295_v16  }
  0x60   :  { %200 = vperm.xlu1 %1102, %v1264_v12  }
  0x63   :  { %316 = vperm.xlu0 %1107, %v1275_v14  }
  0x64   :  { %1103 = vset.pattern.permute.xlu1 %v1150_v7 }
  0x65   :  { %122 = vperm.xlu1 %1103, %v1304_v17  }
  0x69   :  { %1105 = vset.pattern.permute.xlu1 %v1149_v0 }
  0x6a   :  { %208 = vperm.xlu1 %1105, %v1304_v17  }
  0x6e   :  { %1106 = vset.pattern.permute.xlu1 %v1151_v19 }
  0x6f   :  { %260 = vperm.xlu1 %1106, %v1197_v2  }
  0x73   :  { %268 = vperm.xlu1 %1106, %v1192_v1  }
  0x77   :  { %272 = vperm.xlu1 %1106, %v1221_v6  }
  0x7b   :  { %280 = vperm.xlu1 %1106, %v1239_v9  }
  0x7f   :  { %288 = vperm.xlu1 %1106, %v1254_v11  }
  0x83   :  { %296 = vperm.xlu1 %1106, %v1249_v10  }
  0x87   :  { %304 = vperm.xlu1 %1106, %v1287_v15  }
  0x8b   :  { %312 = vperm.xlu1 %1106, %v1264_v12  }
  0x8f   :  { %320 = vperm.xlu1 %1106, %v1304_v17  }
  0x93   :  { %v149_v20 = vpop.permute.xlu1 %148  ;;  %v157_v21 = vpop.permute.xlu0 %156 }
  0x97   :  { %v153_v22 = vpop.permute.xlu1 %152  ;;  %v173_v23 = vpop.permute.xlu0 %172 }
  0x9b   :  { %v1315_v24 = vpop.permute.xlu0 %188 }
  0x9c   :  { %v63_v25 = vpop.permute.xlu1 %62 }
  0x9d   :  { %v134_v34 = vmul.f32 %v1322_v26, %v63_v25 }
  0xa0   :  { %v48_v27 = vpop.permute.xlu0 %47 }
  0xa1   :  { %v131_v28 = vmul.f32 %v1322_v26, %v48_v27  ;;  %v161_v29 = vpop.permute.xlu1 %160 }
  0xa2   :  { %v214_v38 = vadd.f32 %v161_v29, %v134_v34 }
  0xa3   :  { %v211_v31 = vadd.f32 %v149_v20, %v131_v28 }
  0xa4   :  { %v53_v30 = vpop.permute.xlu0 %52  ;;  %v230_v46 = vmax.f32 %v214_v38, 0.0 }
  0xa5   :  { %v132_v32 = vmul.f32 %v1322_v26, %v53_v30  ;;  %v227_v37 = vmax.f32 %v211_v31, 0.0 }
  0xa6   :  { %v68_v33 = vpop.permute.xlu1 %67 }
  0xa7   :  { %v212_v35 = vadd.f32 %v153_v22, %v132_v32  ;;  %v135_v44 = vmul.f32 %v1322_v26, %v68_v33 }
  0xa8   :  { %v58_v36 = vpop.permute.xlu0 %57 }
  0xa9   :  { %v228_v39 = vmax.f32 %v212_v35, 0.0  ;;  %v133_v40 = vmul.f32 %v1322_v26, %v58_v36 }
  0xab   :  { %v213_v41 = vadd.f32 %v157_v21, %v133_v40  ;;  %v165_v42 = vpop.permute.xlu1 %164  ;;  %v1015_v43 = vpack.c.bf16 %v228_v39, %v227_v37 }
  0xac   :  { %v73_v45 = vpop.permute.xlu0 %72  ;;  %v215_v49 = vadd.f32 %v165_v42, %v135_v44 }
  0xad   :  { %v229_v47 = vmax.f32 %v213_v41, 0.0  ;;  %v136_v48 = vmul.f32 %v1322_v26, %v73_v45  ;;  %1016 = vmatprep.subr.bf16.mxu0 %v1015_v43 }
  0xae   :  { %1018 = vmatpush3.bf16.msra.mxu0 %v1015_v43  ;;  %v231_v53 = vmax.f32 %v215_v49, 0.0 }
  0xaf   :  { %v169_v50 = vpop.permute.xlu1 %168  ;;  %v1019_v51 = vpack.c.bf16 %v230_v46, %v229_v47 }
  0xb0   :  { %v216_v52 = vadd.f32 %v169_v50, %v136_v48  ;;  %v78_v55 = vpop.permute.xlu0 %77 }
  0xb1   :  { %1020 = vmatprep.subr.bf16.mxu0 %v1019_v51  ;;  %v137_v57 = vmul.f32 %v1322_v26, %v78_v55 }
  0xb2   :  { %v232_v54 = vmax.f32 %v216_v52, 0.0  ;;  %1022 = vmatpush3.bf16.msra.mxu0 %v1019_v51 }
  0xb3   :  { %v217_v59 = vadd.f32 %v173_v23, %v137_v57 }
  0xb4   :  { %v1023_v56 = vpack.c.bf16 %v232_v54, %v231_v53  ;;  %v83_v58 = vpop.permute.xlu1 %82  ;;  %v93_v19 = vpop.permute.xlu0 %92 }
  0xb5   :  { %v138_v60 = vmul.f32 %v1322_v26, %v83_v58  ;;  %v233_v63 = vmax.f32 %v217_v59, 0.0  ;;  %v140_v21 = vmul.f32 %v1322_v26, %v93_v19  ;;  %v249_v19 = vld [vmem:[#allocation2 + $0x30] sm:$0xff] }
  0xb6   :  { %1024 = vmatprep.subr.bf16.mxu0 %v1023_v56 }
  0xb7   :  { %1026 = vmatpush3.bf16.msra.mxu0 %v1023_v56 }
  0xb8   :  { %v98_v23 = vpop.permute.xlu0 %97 }
  0xb9   :  { %v177_v61 = vpop.permute.xlu1 %176  ;;  %v141_v31 = vmul.f32 %v1322_v26, %v98_v23  ;;  %v257_v23 = vld [vmem:[#allocation2 + $0x70] sm:$0xff] }
  0xba   :  { %v218_v62 = vadd.f32 %v177_v61, %v138_v60 }
  0xbb   :  { %v221_v34 = vadd.f32 %v1315_v24, %v141_v31  ;;  %v1152_v31 = vmov 3  }
  0xbc   :  { %v234_v0 = vmax.f32 %v218_v62, 0.0  ;;  %v113_v42 = vpop.permute.xlu0 %112  ;;  %v244_v62 = vld [vmem:[#allocation2 + $0x8] sm:$0xff]  ;;  %1109 = vset.pattern.permute.xlu1 %v1152_v31  ;;  %1108 = vset.pattern.permute.xlu0 %v1152_v31 }
  0xbd   :  { %v237_v38 = vmax.f32 %v221_v34, 0.0  ;;  %v144_v45 = vmul.f32 %v1322_v26, %v113_v42  ;;  %506 = vperm.xlu1 %1109, %v1209_v4   ;;  %502 = vperm.xlu0 %1108, %v1197_v2  }
  0xbe   :  { %v1027_v7 = vpack.c.bf16 %v234_v0, %v233_v63  ;;  %v88_v18 = vpop.permute.xlu1 %87  ;;  %v245_v63 = vld [vmem:[#allocation2 + $0x10] sm:$0xff]  ;;  %v246_v0 = vld [vmem:[#allocation2 + $0x18] sm:$0xff] }
  0xbf   :  { %v139_v22 = vmul.f32 %v1322_v26, %v88_v18  ;;  %v248_v18 = vld [vmem:[#allocation2 + $0x28] sm:$0xff] }
  0xc0   :  { %1028 = vmatprep.subr.bf16.mxu0 %v1027_v7  ;;  %v118_v47 = vpop.permute.xlu0 %117 }
  0xc1   :  { %1030 = vmatpush3.bf16.msra.mxu0 %v1027_v7  ;;  %v145_v51 = vmul.f32 %v1322_v26, %v118_v47  ;;  %v247_v7 = vld [vmem:[#allocation2 + $0x20] sm:$0xff]  ;;  %510 = vperm.xlu1 %1109, %v1192_v1  }
  0xc2   :  { %514 = vperm.xlu0 %1108, %v1221_v6  }
  0xc3   :  { %v181_v20 = vpop.permute.xlu1 %180 }
  0xc4   :  { %v219_v25 = vadd.f32 %v181_v20, %v139_v22  ;;  %v251_v20 = vld [vmem:[#allocation2 + $0x40] sm:$0xff]  ;;  %v253_v22 = vld [vmem:[#allocation2 + $0x50] sm:$0xff] }
  0xc5   :  { %v205_v54 = vpop.permute.xlu0 %204  ;;  %518 = vperm.xlu1 %1109, %v1231_v8  }
  0xc6   :  { %v235_v29 = vmax.f32 %v219_v25, 0.0  ;;  %v225_v55 = vadd.f32 %v205_v54, %v145_v51  ;;  %v254_v25 = vld [vmem:[#allocation2 + $0x58] sm:$0xff]  ;;  %522 = vperm.xlu0 %1108, %v1239_v9  }
  0xc7   :  { %v185_v27 = vpop.permute.xlu1 %184 }
  0xc8   :  { %v220_v28 = vadd.f32 %v185_v27, %v140_v21  ;;  %v241_v59 = vmax.f32 %v225_v55, 0.0  ;;  %v252_v21 = vld [vmem:[#allocation2 + $0x48] sm:$0xff]  ;;  %v255_v27 = vld [vmem:[#allocation2 + $0x60] sm:$0xff] }
  0xca   :  { %v236_v30 = vmax.f32 %v220_v28, 0.0  ;;  %v256_v28 = vld [vmem:[#allocation2 + $0x68] sm:$0xff]  ;;  %526 = vperm.xlu0 %1108, %v1204_v3  }
  0xcc   :  { %v1031_v32 = vpack.c.bf16 %v236_v30, %v235_v29  ;;  %v103_v33 = vpop.permute.xlu1 %102  ;;  %v258_v29 = vld [vmem:[#allocation2 + $0x78] sm:$0xff]  ;;  %v485_v30 = vld [vmem:[#allocation2 + $0x80] sm:$0xff] }
  0xcd   :  { %v142_v35 = vmul.f32 %v1322_v26, %v103_v33  ;;  %991 = vmatprep.mubr.f32.mxu1 %v485_v30 }
  0xce   :  { %1032 = vmatprep.subr.bf16.mxu0 %v1031_v32 }
  0xcf   :  { %1034 = vmatpush3.bf16.msra.mxu0 %v1031_v32  ;;  %v1153_v32 = vmov 4  }
  0xd0   :  { %1110 = vset.pattern.permute.xlu1 %v1153_v32  ;;  %1111 = vset.pattern.permute.xlu0 %v1153_v32 }
  0xd1   :  { %v193_v36 = vpop.permute.xlu1 %192  ;;  %727 = vperm.xlu1 %1110, %v1197_v2   ;;  %731 = vperm.xlu0 %1111, %v1209_v4   ;;  %v1154_v4 = vmov 5  }
  0xd2   :  { %v222_v37 = vadd.f32 %v193_v36, %v142_v35 }
  0xd4   :  { %v238_v39 = vmax.f32 %v222_v37, 0.0 }
  0xd5   :  { %735 = vperm.xlu1 %1110, %v1192_v1   ;;  %747 = vperm.xlu0 %1111, %v1239_v9  }
  0xd6   :  { %v1035_v40 = vpack.c.bf16 %v238_v39, %v237_v38  ;;  %v108_v41 = vpop.permute.xlu1 %107 }
  0xd7   :  { %v143_v44 = vmul.f32 %v1322_v26, %v108_v41 }
  0xd8   :  { %1036 = vmatprep.subr.bf16.mxu0 %v1035_v40 }
  0xd9   :  { %1038 = vmatpush3.bf16.msra.mxu0 %v1035_v40  ;;  %739 = vperm.xlu1 %1110, %v1221_v6  }
  0xda   :  { %759 = vperm.xlu0 %1111, %v1269_v13  }
  0xdb   :  { %v197_v43 = vpop.permute.xlu1 %196 }
  0xdc   :  { %v223_v46 = vadd.f32 %v197_v43, %v143_v44 }
  0xdd   :  { %743 = vperm.xlu1 %1110, %v1231_v8   ;;  %v265_v8 = vpop.permute.xlu0 %264 }
  0xde   :  { %v239_v49 = vmax.f32 %v223_v46, 0.0  ;;  %771 = vperm.xlu0 %1111, %v1287_v15  }
  0xdf   :  { %v201_v48 = vpop.permute.xlu1 %200 }
  0xe0   :  { %v224_v24 = vadd.f32 %v201_v48, %v144_v45 }
  0xe1   :  { %1112 = vset.pattern.permute.xlu1 %v1152_v31 }
  0xe2   :  { %v240_v50 = vmax.f32 %v224_v24, 0.0  ;;  %530 = vperm.xlu1 %1112, %v1254_v11   ;;  %1117 = vset.pattern.permute.xlu0 %v1152_v31 }
  0xe3   :  { %538 = vperm.xlu0 %1117, %v1249_v10  }
  0xe4   :  { %v1039_v52 = vpack.c.bf16 %v240_v50, %v239_v49  ;;  %v123_v53 = vpop.permute.xlu1 %122 }
  0xe5   :  { %v146_v56 = vmul.f32 %v1322_v26, %v123_v53  ;;  %v250_v26 = vld [vmem:[#allocation2 + $0x38] sm:$0xff] }
  0xe6   :  { %1040 = vmatprep.subr.bf16.mxu0 %v1039_v52  ;;  %534 = vperm.xlu1 %1112, %v1269_v13  }
  0xe7   :  { %1042 = vmatpush3.bf16.msra.mxu0 %v1039_v52  ;;  %550 = vperm.xlu0 %1117, %v1295_v16  }
  0xe9   :  { %v209_v57 = vpop.permute.xlu1 %208 }
  0xea   :  { %v226_v58 = vadd.f32 %v209_v57, %v146_v56  ;;  %1113 = vset.pattern.permute.xlu1 %v1153_v32 }
  0xeb   :  { %751 = vperm.xlu1 %1113, %v1204_v3   ;;  %562 = vperm.xlu0 %1117, %v1304_v17  }
  0xec   :  { %v242_v60 = vmax.f32 %v226_v58, 0.0 }
  0xee   :  { %v1043_v61 = vpack.c.bf16 %v242_v60, %v241_v59  ;;  %v261_v1 = vpop.permute.xlu1 %260 }
  0xef   :  { %755 = vperm.xlu1 %1113, %v1254_v11   ;;  %1119 = vset.pattern.permute.xlu0 %v1153_v32  ;;  %v277_v11 = vpop.permute.xlu0 %276 }
  0xf0   :  { %1044 = vmatprep.subr.bf16.mxu0 %v1043_v61  ;;  %787 = vperm.xlu0 %1119, %v1304_v17  }
  0xf1   :  { %1046 = vmatpush3.bf16.msra.mxu0 %v1043_v61 }
  0xf2   :  { %v269_v6 = vpop.permute.xlu1 %268 }
  0xf3   :  { %1114 = vset.pattern.permute.xlu1 %v1152_v31 }
  0xf4   :  { %936 = vmatmul.mubr.f32.vlgmr.msra.gmra.mrb[0].mxu0 %v244_v62  ;;  %542 = vperm.xlu1 %1114, %v1216_v5  }
  0xf5   :  { %938 = vmatprep.mubr.f32.mxu0 %v245_v63  ;;  %1121 = vset.pattern.permute.xlu0 %v1154_v4 }
  0xf6   :  { %v273_v3 = vpop.permute.xlu1 %272 }
  0xf8   :  { %939 = vmatmul.mubr.f32.gmra.mrb[2].mxu0 %v246_v0  ;;  %546 = vperm.xlu1 %1114, %v1287_v15  }
  0xf9   :  { %941 = vmatprep.mubr.f32.mxu0 %v247_v7 }
  0xfa   :  { %v281_v9 = vpop.permute.xlu1 %280 }
  0xfc   :  { %942 = vmatmul.mubr.f32.gmra.mrb[4].mxu0 %v248_v18  ;;  %1115 = vset.pattern.permute.xlu1 %v1153_v32 }
  0xfd   :  { %944 = vmatprep.mubr.f32.mxu0 %v249_v19  ;;  %763 = vperm.xlu1 %1115, %v1249_v10   ;;  %v285_v10 = vpop.permute.xlu0 %284 }
  0xfe   :  { %v289_v36 = vpop.permute.xlu1 %288 }
 0x100   :  { %945 = vmatmul.mubr.f32.gmra.mrb[6].mxu0 %v250_v26 }
 0x101   :  { %947 = vmatprep.mubr.f32.mxu0 %v251_v20  ;;  %767 = vperm.xlu1 %1115, %v1216_v5   ;;  %v293_v24 = vpop.permute.xlu0 %292 }
 0x102   :  { %v297_v46 = vpop.permute.xlu1 %296 }
 0x104   :  { %948 = vmatmul.mubr.f32.gmra.mrb[8].mxu0 %v252_v21 }
 0x105   :  { %950 = vmatprep.mubr.f32.mxu0 %v253_v22  ;;  %1116 = vset.pattern.permute.xlu1 %v1152_v31 }
 0x106   :  { %554 = vperm.xlu1 %1116, %v1264_v12   ;;  %v305_v57 = vpop.permute.xlu1 %304 }
 0x108   :  { %951 = vmatmul.mubr.f32.gmra.mrb[10].mxu0 %v254_v25 }
 0x109   :  { %953 = vmatprep.mubr.f32.mxu0 %v255_v27 }
 0x10a   :  { %558 = vperm.xlu1 %1116, %v1275_v14   ;;  %v313_v26 = vpop.permute.xlu1 %312 }
 0x10c   :  { %954 = vmatmul.mubr.f32.gmra.mrb[12].mxu0 %v256_v28 }
 0x10d   :  { %956 = vmatprep.mubr.f32.mxu0 %v257_v23 }
 0x10e   :  { %1118 = vset.pattern.permute.xlu1 %v1153_v32  ;;  %v321_v32 = vpop.permute.xlu1 %320 }
 0x10f   :  { %775 = vperm.xlu1 %1118, %v1295_v16   ;;  %v301_v16 = vpop.permute.xlu0 %300 }
 0x110   :  { %957 = vmatmul.mubr.f32.gmra.mrb[14].mxu0 %v258_v29 }
 0x113   :  { %779 = vperm.xlu1 %1118, %v1264_v12   ;;  %v309_v22 = vpop.permute.xlu0 %308 }
 0x117   :  { %783 = vperm.xlu1 %1118, %v1275_v14  }
 0x11b   :  { %1120 = vset.pattern.permute.xlu1 %v1154_v4  ;;  %v317_v4 = vpop.permute.xlu0 %316 }
 0x11c   :  { %828 = vperm.xlu1 %1120, %v1197_v2  }
 0x1c7   :  { %v937_v13 = vpop.f32.mrb[0].mxu0 }
 0x1c8   :  { %v395_v17 = vadd.f32 %v937_v13, %v265_v8  ;;  %v389_v33 = vpop.f32.mrb[1].mxu0 }
 0x1c9   :  { %v390_v34 = vadd.f32 %v389_v33, %v261_v1  ;;  %v486_v33 = vld [vmem:[#allocation2 + $0x88] sm:$0xff] }
 0x1ca   :  { %v469_v35 = vmax.f32 %v395_v17, 0.0 }
 0x1cb   :  { %v468_v37 = vmax.f32 %v390_v34, 0.0  ;;  %v940_v15 = vpop.f32.mrb[2].mxu0  ;;  %v487_v34 = vld [vmem:[#allocation2 + $0x90] sm:$0xff] }
 0x1cc   :  { %v405_v38 = vadd.f32 %v940_v15, %v273_v3  ;;  %v399_v39 = vpop.f32.mrb[3].mxu0  ;;  %v491_v15 = vld [vmem:[#allocation2 + $0xb0] sm:$0xff] }
 0x1cd   :  { %v400_v40 = vadd.f32 %v399_v39, %v269_v6  ;;  %v1047_v5 = vpack.c.bf16 %v469_v35, %v468_v37  ;;  %v488_v35 = vld [vmem:[#allocation2 + $0x98] sm:$0xff]  ;;  %v490_v37 = vld [vmem:[#allocation2 + $0xa8] sm:$0xff] }
 0x1ce   :  { %v471_v41 = vmax.f32 %v405_v38, 0.0  ;;  %v493_v38 = vld [vmem:[#allocation2 + $0xc0] sm:$0xff]  ;;  %v494_v39 = vld [vmem:[#allocation2 + $0xc8] sm:$0xff] }
 0x1cf   :  { %v470_v42 = vmax.f32 %v400_v40, 0.0  ;;  %v943_v43 = vpop.f32.mrb[4].mxu0  ;;  %1048 = vmatprep.subr.bf16.mxu1 %v1047_v5  ;;  %v495_v40 = vld [vmem:[#allocation2 + $0xd0] sm:$0xff] }
 0x1d0   :  { %v415_v44 = vadd.f32 %v943_v43, %v281_v9  ;;  %v409_v45 = vpop.f32.mrb[5].mxu0  ;;  %1050 = vmatpush3.bf16.msra.mxu1 %v1047_v5  ;;  %v496_v5 = vld [vmem:[#allocation2 + $0xd8] sm:$0xff]  ;;  %v499_v43 = vld [vmem:[#allocation2 + $0xf0] sm:$0xff] }
 0x1d1   :  { %v1051_v47 = vpack.c.bf16 %v471_v41, %v470_v42  ;;  %v410_v48 = vadd.f32 %v409_v45, %v277_v11  ;;  %v497_v41 = vld [vmem:[#allocation2 + $0xe0] sm:$0xff]  ;;  %v498_v42 = vld [vmem:[#allocation2 + $0xe8] sm:$0xff]  ;;  %v507_v45 = vpop.permute.xlu1 %506 }
 0x1d2   :  { %v473_v49 = vmax.f32 %v415_v44, 0.0  ;;  %v500_v44 = vld [vmem:[#allocation2 + $0xf8] sm:$0xff] }
 0x1d3   :  { %v472_v50 = vmax.f32 %v410_v48, 0.0  ;;  %v946_v51 = vpop.f32.mrb[6].mxu0  ;;  %1052 = vmatprep.subr.bf16.mxu1 %v1051_v47 }
 0x1d4   :  { %v425_v52 = vadd.f32 %v946_v51, %v289_v36  ;;  %v419_v53 = vpop.f32.mrb[7].mxu0  ;;  %1054 = vmatpush3.bf16.msra.mxu1 %v1051_v47  ;;  %v489_v36 = vld [vmem:[#allocation2 + $0xa0] sm:$0xff] }
 0x1d5   :  { %v1055_v54 = vpack.c.bf16 %v473_v49, %v472_v50  ;;  %v420_v55 = vadd.f32 %v419_v53, %v285_v10  ;;  %v492_v10 = vld [vmem:[#allocation2 + $0xb8] sm:$0xff]  ;;  %v503_v53 = vpop.permute.xlu0 %502 }
 0x1d6   :  { %v475_v56 = vmax.f32 %v425_v52, 0.0 }
 0x1d7   :  { %v474_v58 = vmax.f32 %v420_v55, 0.0  ;;  %v949_v59 = vpop.f32.mrb[8].mxu0  ;;  %1056 = vmatprep.subr.bf16.mxu1 %v1055_v54 }
 0x1d8   :  { %v435_v60 = vadd.f32 %v949_v59, %v297_v46  ;;  %v429_v61 = vpop.f32.mrb[9].mxu0  ;;  %1058 = vmatpush3.bf16.msra.mxu1 %v1055_v54  ;;  %v511_v46 = vpop.permute.xlu1 %510 }
 0x1d9   :  { %v1059_v62 = vpack.c.bf16 %v475_v56, %v474_v58  ;;  %v430_v63 = vadd.f32 %v429_v61, %v293_v24  ;;  %v515_v55 = vpop.permute.xlu0 %514 }
 0x1da   :  { %v477_v0 = vmax.f32 %v435_v60, 0.0 }
 0x1db   :  { %v476_v7 = vmax.f32 %v430_v63, 0.0  ;;  %v952_v18 = vpop.f32.mrb[10].mxu0  ;;  %1060 = vmatprep.subr.bf16.mxu1 %v1059_v62 }
 0x1dc   :  { %v445_v12 = vadd.f32 %v952_v18, %v305_v57  ;;  %v439_v19 = vpop.f32.mrb[11].mxu0  ;;  %1062 = vmatpush3.bf16.msra.mxu1 %v1059_v62  ;;  %v519_v47 = vpop.permute.xlu1 %518 }
 0x1dd   :  { %v1063_v20 = vpack.c.bf16 %v477_v0, %v476_v7  ;;  %v440_v21 = vadd.f32 %v439_v19, %v301_v16  ;;  %v523_v57 = vpop.permute.xlu0 %522 }
 0x1de   :  { %v479_v25 = vmax.f32 %v445_v12, 0.0 }
 0x1df   :  { %v478_v27 = vmax.f32 %v440_v21, 0.0  ;;  %v955_v14 = vpop.f32.mrb[12].mxu0  ;;  %1064 = vmatprep.subr.bf16.mxu1 %v1063_v20 }
 0x1e0   :  { %v455_v28 = vadd.f32 %v955_v14, %v313_v26  ;;  %v449_v23 = vpop.f32.mrb[13].mxu0  ;;  %1066 = vmatpush3.bf16.msra.mxu1 %v1063_v20  ;;  %v728_v48 = vpop.permute.xlu1 %727 }
 0x1e1   :  { %v1067_v29 = vpack.c.bf16 %v479_v25, %v478_v27  ;;  %v450_v30 = vadd.f32 %v449_v23, %v309_v22  ;;  %v527_v59 = vpop.permute.xlu0 %526 }
 0x1e2   :  { %v481_v31 = vmax.f32 %v455_v28, 0.0 }
 0x1e3   :  { %v480_v1 = vmax.f32 %v450_v30, 0.0  ;;  %v958_v6 = vpop.f32.mrb[14].mxu0  ;;  %1068 = vmatprep.subr.bf16.mxu1 %v1067_v29 }
 0x1e4   :  { %v465_v3 = vadd.f32 %v958_v6, %v321_v32  ;;  %v459_v8 = vpop.f32.mrb[15].mxu0  ;;  %1070 = vmatpush3.bf16.msra.mxu1 %v1067_v29  ;;  %v736_v24 = vpop.permute.xlu1 %735 }
 0x1e5   :  { %v1071_v2 = vpack.c.bf16 %v481_v31, %v480_v1  ;;  %v460_v9 = vadd.f32 %v459_v8, %v317_v4  ;;  %v732_v60 = vpop.permute.xlu0 %731 }
 0x1e6   :  { %v483_v11 = vmax.f32 %v465_v3, 0.0 }
 0x1e7   :  { %v482_v13 = vmax.f32 %v460_v9, 0.0  ;;  %1072 = vmatprep.subr.bf16.mxu1 %v1071_v2 }
 0x1e8   :  { %1074 = vmatpush3.bf16.msra.mxu1 %v1071_v2  ;;  %v740_v49 = vpop.permute.xlu1 %739 }
 0x1e9   :  { %v1075_v17 = vpack.c.bf16 %v483_v11, %v482_v13  ;;  %v748_v62 = vpop.permute.xlu0 %747 }
 0x1eb   :  { %1076 = vmatprep.subr.bf16.mxu1 %v1075_v17 }
 0x1ec   :  { %1078 = vmatpush3.bf16.msra.mxu1 %v1075_v17  ;;  %v744_v50 = vpop.permute.xlu1 %743 }
 0x1ed   :  { %v760_v27 = vpop.permute.xlu0 %759 }
 0x1ef   :  { %992 = vmatmul.mubr.f32.vlgmr.msra.gmra.mrb[0].mxu1 %v486_v33 }
 0x1f0   :  { %994 = vmatprep.mubr.f32.mxu1 %v487_v34  ;;  %v531_v51 = vpop.permute.xlu1 %530 }
 0x1f1   :  { %v772_v8 = vpop.permute.xlu0 %771 }
 0x1f3   :  { %995 = vmatmul.mubr.f32.gmra.mrb[2].mxu1 %v488_v35 }
 0x1f4   :  { %997 = vmatprep.mubr.f32.mxu1 %v489_v36  ;;  %v535_v52 = vpop.permute.xlu1 %534 }
 0x1f7   :  { %998 = vmatmul.mubr.f32.gmra.mrb[4].mxu1 %v490_v37 }
 0x1f8   :  { %1000 = vmatprep.mubr.f32.mxu1 %v491_v15  ;;  %v752_v54 = vpop.permute.xlu1 %751 }
 0x1fb   :  { %1001 = vmatmul.mubr.f32.gmra.mrb[6].mxu1 %v492_v10 }
 0x1fc   :  { %1003 = vmatprep.mubr.f32.mxu1 %v493_v38  ;;  %v756_v56 = vpop.permute.xlu1 %755 }
 0x1ff   :  { %1004 = vmatmul.mubr.f32.gmra.mrb[8].mxu1 %v494_v39  ;;  %v539_v39 = vpop.permute.xlu0 %538 }
 0x200   :  { %1006 = vmatprep.mubr.f32.mxu1 %v495_v40  ;;  %v1384_v58 = vpop.permute.xlu1 %542 }
 0x203   :  { %1007 = vmatmul.mubr.f32.gmra.mrb[10].mxu1 %v496_v5 }
 0x204   :  { %1009 = vmatprep.mubr.f32.mxu1 %v497_v41  ;;  %v547_v16 = vpop.permute.xlu1 %546 }
 0x207   :  { %1010 = vmatmul.mubr.f32.gmra.mrb[12].mxu1 %v498_v42 }
 0x208   :  { %1012 = vmatprep.mubr.f32.mxu1 %v499_v43  ;;  %v764_v61 = vpop.permute.xlu1 %763 }
 0x20b   :  { %1013 = vmatmul.mubr.f32.gmra.mrb[14].mxu1 %v500_v44 }
 0x20c   :  { %v768_v19 = vpop.permute.xlu1 %767 }
 0x210   :  { %v555_v1 = vpop.permute.xlu1 %554 }
 0x214   :  { %v559_v15 = vpop.permute.xlu1 %558 }
 0x2c2   :  { %v993_v63 = vpop.f32.mrb[0].mxu1 }
 0x2c3   :  { %v637_v0 = vadd.f32 %v993_v63, %v507_v45  ;;  %v631_v7 = vpop.f32.mrb[1].mxu1 }
 0x2c4   :  { %v632_v18 = vadd.f32 %v631_v7, %v503_v53 }
 0x2c5   :  { %v711_v12 = vmax.f32 %v637_v0, 0.0 }
 0x2c6   :  { %v710_v26 = vmax.f32 %v632_v18, 0.0  ;;  %v996_v20 = vpop.f32.mrb[2].mxu1 }
 0x2c7   :  { %v791_v21 = vmul.f32 %v732_v60, %v711_v12  ;;  %v647_v22 = vadd.f32 %v996_v20, %v515_v55  ;;  %v641_v25 = vpop.f32.mrb[3].mxu1 }
 0x2c8   :  { %v790_v14 = vmul.f32 %v728_v48, %v710_v26  ;;  %v642_v28 = vadd.f32 %v641_v25, %v511_v46 }
 0x2c9   :  { %v713_v29 = vmax.f32 %v647_v22, 0.0 }
 0x2ca   :  { %v806_v23 = vadd.f32 %v791_v21, %v790_v14  ;;  %v712_v30 = vmax.f32 %v642_v28, 0.0  ;;  %v999_v31 = vpop.f32.mrb[4].mxu1 }
 0x2cb   :  { %v657_v32 = vadd.f32 %v999_v31, %v523_v57  ;;  %v651_v6 = vpop.f32.mrb[5].mxu1  ;;  %v793_v2 = vmul.f32 %v740_v49, %v713_v29  ;;  %v551_v57 = vpop.permute.xlu0 %550 }
 0x2cc   :  { %v792_v4 = vmul.f32 %v736_v24, %v712_v30  ;;  %v652_v3 = vadd.f32 %v651_v6, %v519_v47 }
 0x2cd   :  { %v715_v11 = vmax.f32 %v657_v32, 0.0 }
 0x2ce   :  { %v807_v9 = vadd.f32 %v806_v23, %v792_v4  ;;  %v714_v13 = vmax.f32 %v652_v3, 0.0  ;;  %v1002_v17 = vpop.f32.mrb[6].mxu1 }
 0x2cf   :  { %v667_v33 = vadd.f32 %v1002_v17, %v531_v51  ;;  %v661_v34 = vpop.f32.mrb[7].mxu1  ;;  %v795_v10 = vmul.f32 %v748_v62, %v715_v11  ;;  %v563_v22 = vpop.permute.xlu0 %562 }
 0x2d0   :  { %v794_v35 = vmul.f32 %v744_v50, %v714_v13  ;;  %v808_v36 = vadd.f32 %v807_v9, %v793_v2  ;;  %v662_v37 = vadd.f32 %v661_v34, %v527_v59  ;;  %v776_v50 = vpop.permute.xlu1 %775 }
 0x2d1   :  { %v717_v40 = vmax.f32 %v667_v33, 0.0 }
 0x2d2   :  { %v809_v38 = vadd.f32 %v808_v36, %v794_v35  ;;  %v716_v5 = vmax.f32 %v662_v37, 0.0  ;;  %v1005_v41 = vpop.f32.mrb[8].mxu1 }
 0x2d3   :  { %v677_v42 = vadd.f32 %v1005_v41, %v539_v39  ;;  %v671_v43 = vpop.f32.mrb[9].mxu1  ;;  %v797_v47 = vmul.f32 %v756_v56, %v717_v40 }
 0x2d4   :  { %v796_v44 = vmul.f32 %v752_v54, %v716_v5  ;;  %v810_v45 = vadd.f32 %v809_v38, %v795_v10  ;;  %v672_v46 = vadd.f32 %v671_v43, %v535_v52  ;;  %v780_v21 = vpop.permute.xlu1 %779 }
 0x2d5   :  { %v719_v24 = vmax.f32 %v677_v42, 0.0 }
 0x2d6   :  { %v811_v48 = vadd.f32 %v810_v45, %v796_v44  ;;  %v718_v49 = vmax.f32 %v672_v46, 0.0  ;;  %v1008_v51 = vpop.f32.mrb[10].mxu1 }
 0x2d7   :  { %v687_v53 = vadd.f32 %v1008_v51, %v547_v16  ;;  %v681_v55 = vpop.f32.mrb[11].mxu1  ;;  %v799_v63 = vmul.f32 %v764_v61, %v719_v24 }
 0x2d8   :  { %v798_v59 = vmul.f32 %v760_v27, %v718_v49  ;;  %v812_v60 = vadd.f32 %v811_v48, %v797_v47  ;;  %v682_v62 = vadd.f32 %v681_v55, %v1384_v58  ;;  %v784_v4 = vpop.permute.xlu1 %783 }
 0x2d9   :  { %v721_v7 = vmax.f32 %v687_v53, 0.0 }
 0x2da   :  { %v813_v0 = vadd.f32 %v812_v60, %v798_v59  ;;  %v720_v18 = vmax.f32 %v682_v62, 0.0  ;;  %v1011_v54 = vpop.f32.mrb[12].mxu1 }
 0x2db   :  { %v697_v12 = vadd.f32 %v1011_v54, %v555_v1  ;;  %v691_v52 = vpop.f32.mrb[13].mxu1  ;;  %v801_v25 = vmul.f32 %v772_v8, %v721_v7 }
 0x2dc   :  { %v800_v56 = vmul.f32 %v768_v19, %v720_v18  ;;  %v814_v26 = vadd.f32 %v813_v0, %v799_v63  ;;  %v692_v20 = vadd.f32 %v691_v52, %v551_v57  ;;  %v788_v19 = vpop.permute.xlu0 %787  ;;  %v829_v36 = vpop.permute.xlu1 %828 }
 0x2dd   :  { %v723_v14 = vmax.f32 %v697_v12, 0.0 }
 0x2de   :  { %v815_v16 = vadd.f32 %v814_v26, %v800_v56  ;;  %v722_v28 = vmax.f32 %v692_v20, 0.0  ;;  %v1014_v27 = vpop.f32.mrb[14].mxu1 }
 0x2df   :  { %v707_v23 = vadd.f32 %v1014_v27, %v563_v22  ;;  %v701_v29 = vpop.f32.mrb[15].mxu1  ;;  %v803_v31 = vmul.f32 %v780_v21, %v723_v14 }
 0x2e0   :  { %v802_v58 = vmul.f32 %v776_v50, %v722_v28  ;;  %v816_v61 = vadd.f32 %v815_v16, %v801_v25  ;;  %v702_v30 = vadd.f32 %v701_v29, %v559_v15 }
 0x2e1   :  { %v725_v6 = vmax.f32 %v707_v23, 0.0 }
 0x2e2   :  { %v817_v32 = vadd.f32 %v816_v61, %v802_v58  ;;  %v724_v1 = vmax.f32 %v702_v30, 0.0 }
 0x2e3   :  { %v805_v9 = vmul.f32 %v788_v19, %v725_v6 }
 0x2e4   :  { %v804_v3 = vmul.f32 %v784_v4, %v724_v1  ;;  %v818_v2 = vadd.f32 %v817_v32, %v803_v31 }
 0x2e6   :  { %v819_v11 = vadd.f32 %v818_v2, %v804_v3 }
 0x2e8   :  { %v820_v8 = vadd.f32 %v819_v11, %v805_v9 }
 0x2ea   :  { %v821_v13 = vrot.slane %v820_v8, 4 }
 0x2ec   :  { %v822_v17 = vadd.f32 %v821_v13, %v820_v8 }
 0x2ee   :  { %v823_v33 = vrot.slane %v822_v17, 2 }
 0x2f0   :  { %v824_v34 = vadd.f32 %v823_v33, %v822_v17 }
 0x2f2   :  { %v825_v35 = vrot.slane %v824_v34, 1 }
 0x2f4   :  { %v826_v37 = vadd.f32 %v825_v35, %v824_v34 }
 0x2f6   :  { %v831_v10 = vadd.f32 %v829_v36, %v826_v37 }
 0x2f8   :  { %832 = vst [vmem:[%s1393_s3] sm:$0x1] %v831_v10 }
 0x2f9   :  { %837 = vsyncpa [#allocation3], 1 }

</bundles_post_ra>
